<compile_context>
chip_gen: v7x
topology: tpu7x:2x2x1
jax: 0.10.0
libtpu: 0.0.40
codegen_flags: <defaults>
</compile_context>

<pallas_src>
import functools

import jax
import jax.numpy as jnp
from jax.experimental import pallas as pl
from jax.experimental.pallas import tpu as pltpu

_MIN_TILE = 16  # bf16 sublane packing (also satisfies the f32 multiple-of-8 rule)


def _qnet_kernel(x_ref, w1_ref, b1_ref, w2_ref, b2_ref, o_ref):
    # One B-tile per grid step.  Weights/biases are VMEM-resident (constant
    # index_maps); only x and out stream HBM<->VMEM.
    x = x_ref[...]                                        # (bt, In)   param dtype
    h = jnp.dot(x, w1_ref[...],
                preferred_element_type=jnp.float32)       # (bt, H)    f32 acc (MXU)
    h = jnp.maximum(h + b1_ref[...], 0.0)                 # bias+ReLU on f32 acc (v5e-safe)
    h = h.astype(w2_ref.dtype)                            # bf16 feed for 2nd MXU dot
    o = jnp.dot(h, w2_ref[...],
                preferred_element_type=jnp.float32)       # (bt, O_pad) lane-dense
    o_ref[...] = (o + b2_ref[...]).astype(o_ref.dtype)


def prepare_qnet_params(w1, b1, w2, b2, *, param_dtype=jnp.bfloat16):
    """One-time parameter preprocessing, hoisted out of the forward hot path.

    Inputs are the *transposed* PyTorch nn.Linear weights, i.e.
      w1:(In,H), b1:(H,), w2:(H,O), b2:(O,)   so the kernel computes x @ W + b.
    Returns (w1p, b1r, w2p, b2p):
      * W1/W2 cast to param_dtype (bf16 default: MXU-native everywhere, halves
        streamed/resident bytes); biases stay f32 (used on the f32 accumulator).
      * W2/b2 zero-padded on the output dim to a multiple of 128 (lane-dense
        stores instead of 3/128-lane masked vst.msk).
    """
    O = w2.shape[1]
    O_pad = max(128, pl.cdiv(O, 128) * 128)
    w1p = jnp.asarray(w1, param_dtype)
    w2p = jnp.pad(jnp.asarray(w2, param_dtype), ((0, 0), (0, O_pad - O)))
    b1r = jnp.asarray(b1, jnp.float32).reshape(1, -1)
    b2p = jnp.pad(jnp.asarray(b2, jnp.float32), (0, O_pad - O)).reshape(1, O_pad)
    return w1p, b1r, w2p, b2p


@functools.partial(jax.jit,
                   static_argnames=("out_size", "b_tile_cap", "out_dtype"))
def linear_qnet_forward(x, w1, b1, w2, b2, *, out_size,
                        b_tile_cap=2048, out_dtype=jnp.float32):
    """out = relu(x @ W1 + b1) @ W2 + b2  (== PyTorch Linear_QNet.forward).

    Params must come from prepare_qnet_params (already padded / cast).
    The whole forward (cast + pad-B + pallas_call + slice) is one jit so the
    glue ops fuse; B is bucketed to a power of two so the Mosaic compile is
    reused across the varying RL replay-batch sizes.
    """
    B, In = x.shape
    H = w1.shape[1]
    O_pad = w2.shape[1]

    # --- B bucketing & tile choice (all tiles multiples of 16 rows) ---------
    B_pad = max(_MIN_TILE, pl.next_power_of_2(B))
    if B_pad >= 2 * b_tile_cap:
        bt = b_tile_cap          # several large steps, per-step overhead amortized
    elif B_pad >= 2 * _MIN_TILE:
        bt = B_pad // 2          # exactly 2 steps -> both v7x TCs via "parallel"
    else:
        bt = B_pad               # tiny batch: a single tile
    grid = (B_pad // bt,)

    x = x.astype(w1.dtype)       # bf16 (or f32) MXU operands; fuses into the jit
    if B_pad != B:
        x = jnp.pad(x, ((0, B_pad - B), (0, 0)))

    out = pl.pallas_call(
        _qnet_kernel,
        out_shape=jax.ShapeDtypeStruct((B_pad, O_pad), out_dtype),
        grid=grid,
        in_specs=[
            pl.BlockSpec((bt, In), lambda i: (i, 0)),     # x: streamed per B-tile
            pl.BlockSpec((In, H), lambda i: (0, 0)),      # W1: VMEM-resident
            pl.BlockSpec((1, H), lambda i: (0, 0)),       # b1: VMEM-resident
            pl.BlockSpec((H, O_pad), lambda i: (0, 0)),   # W2 (padded): VMEM-resident
            pl.BlockSpec((1, O_pad), lambda i: (0, 0)),   # b2 (padded): VMEM-resident
        ],
        out_specs=pl.BlockSpec((bt, O_pad), lambda i: (i, 0)),
        compiler_params=pltpu.CompilerParams(
            dimension_semantics=("parallel",)),           # megacore over B on v7x
    )(x, w1, b1, w2, b2)

    # Strip batch bucketing and lane-padding columns (fused into the same jit).
    return out[:B, :out_size]


if __name__ == "__main__":
    # Snake Q-net shapes: 11 input features -> 32 hidden -> 3 actions.
    B, INPUT, HIDDEN, OUTPUT = 256, 11, 32, 3

    key = jax.random.PRNGKey(0)
    kx, kw1, kb1, kw2, kb2 = jax.random.split(key, 5)

    x = jax.random.normal(kx, (B, INPUT), dtype=jnp.float32)
    # Deterministic params (mimics nn.Linear uniform fan-in init), already in
    # the transposed (in, out) layout the kernel consumes.
    lim1 = 1.0 / (INPUT ** 0.5)
    lim2 = 1.0 / (HIDDEN ** 0.5)
    w1 = jax.random.uniform(kw1, (INPUT, HIDDEN), jnp.float32, -lim1, lim1)
    b1 = jax.random.uniform(kb1, (HIDDEN,), jnp.float32, -lim1, lim1)
    w2 = jax.random.uniform(kw2, (HIDDEN, OUTPUT), jnp.float32, -lim2, lim2)
    b2 = jax.random.uniform(kb2, (OUTPUT,), jnp.float32, -lim2, lim2)

    # Pure-JAX reference (same semantics as the PyTorch forward).
    ref = jnp.maximum(x @ w1 + b1, 0.0) @ w2 + b2

    # 1) Exact f32 path.
    params_f32 = prepare_qnet_params(w1, b1, w2, b2, param_dtype=jnp.float32)
    out_f32 = jax.block_until_ready(
        linear_qnet_forward(x, *params_f32, out_size=OUTPUT))
    assert out_f32.shape == (B, OUTPUT)
    assert jnp.allclose(out_f32, ref, atol=1e-5, rtol=1e-5)

    # 2) Default bf16-operand path (MXU-native everywhere, f32 accumulate).
    params_bf16 = prepare_qnet_params(w1, b1, w2, b2)      # bf16 default
    out_bf16 = jax.block_until_ready(
        linear_qnet_forward(x, *params_bf16, out_size=OUTPUT))
    assert out_bf16.shape == (B, OUTPUT)
    assert jnp.allclose(out_bf16, ref, atol=5e-2, rtol=5e-2)

    # 3) Ragged tiny batch (B=5 -> bucketed to one 16-row tile, grid=(1,)).
    out_small = jax.block_until_ready(
        linear_qnet_forward(x[:5], *params_f32, out_size=OUTPUT))
    assert out_small.shape == (5, OUTPUT)
    assert jnp.allclose(out_small, ref[:5], atol=1e-5, rtol=1e-5)

    # 4) bf16 output store (halves writeback bytes for large replay batches).
    out_bf16_store = jax.block_until_ready(
        linear_qnet_forward(x, *params_bf16, out_size=OUTPUT,
                            out_dtype=jnp.bfloat16))
    assert out_bf16_store.dtype == jnp.bfloat16
    assert jnp.allclose(out_bf16_store.astype(jnp.float32), ref,
                        atol=6e-2, rtol=6e-2)

    # TODO(synk): Linear_QNet.save/load are host-side torch.save I/O with no
    # Pallas equivalent; only forward() is implemented here.
    print("KERNEL_OK")
</pallas_src>

<mosaic_0001>
module attributes {stable_mosaic.version = 11 : i64} {
  func.func @_qnet_kernel(%arg0: i32, %arg1: memref<128x11xf32, #tpu.memory_space<vmem>>, %arg2: memref<11x32xf32, #tpu.memory_space<vmem>>, %arg3: memref<1x32xf32, #tpu.memory_space<vmem>>, %arg4: memref<32x128xf32, #tpu.memory_space<vmem>>, %arg5: memref<1x128xf32, #tpu.memory_space<vmem>>, %arg6: memref<128x128xf32, #tpu.memory_space<vmem>>) attributes {dimension_semantics = [#tpu.dimension_semantics<parallel>], iteration_bounds = array<i64: 2>, scalar_prefetch = 0 : i64, scratch_operands = 0 : i64, tpu.core_type = #tpu.core_type<tc>, window_params = [{transform_indices = @transform_0, window_bounds = array<i64: 128, 11>}, {pipeline_mode = #tpu.pipeline_mode<synchronous>, transform_indices = @transform_1, window_bounds = array<i64: 11, 32>}, {pipeline_mode = #tpu.pipeline_mode<synchronous>, transform_indices = @transform_2, window_bounds = array<i64: 1, 32>}, {pipeline_mode = #tpu.pipeline_mode<synchronous>, transform_indices = @transform_3, window_bounds = array<i64: 32, 128>}, {pipeline_mode = #tpu.pipeline_mode<synchronous>, transform_indices = @transform_4, window_bounds = array<i64: 1, 128>}, {transform_indices = @transform_5, window_bounds = array<i64: 128, 128>}]} {
    %c0 = arith.constant 0 : index
    %c0_0 = arith.constant 0 : index
    %0 = vector.load %arg1[%c0, %c0_0] : memref<128x11xf32, #tpu.memory_space<vmem>>, vector<128x11xf32>
    %c0_1 = arith.constant 0 : index
    %c0_2 = arith.constant 0 : index
    %1 = vector.load %arg2[%c0_1, %c0_2] : memref<11x32xf32, #tpu.memory_space<vmem>>, vector<11x32xf32>
    %cst = arith.constant dense<0.000000e+00> : vector<128x32xf32>
    %2 = tpu.matmul %0, %1, %cst {dimension_numbers = #tpu.dot_dimension_numbers<[1], [0], [0], [1], [0, 0, 1, 1], [], []>} : vector<128x11xf32>, vector<11x32xf32>, vector<128x32xf32> -> vector<128x32xf32>
    %c0_3 = arith.constant 0 : index
    %c0_4 = arith.constant 0 : index
    %3 = vector.load %arg3[%c0_3, %c0_4] : memref<1x32xf32, #tpu.memory_space<vmem>>, vector<1x32xf32>
    %4 = vector.broadcast %3 : vector<1x32xf32> to vector<128x32xf32>
    %5 = arith.addf %2, %4 : vector<128x32xf32>
    %cst_5 = arith.constant 0.000000e+00 : f32
    %6 = vector.broadcast %cst_5 : f32 to vector<128x32xf32>
    %7 = arith.maximumf %5, %6 : vector<128x32xf32>
    %c0_6 = arith.constant 0 : index
    %c0_7 = arith.constant 0 : index
    %8 = vector.load %arg4[%c0_6, %c0_7] : memref<32x128xf32, #tpu.memory_space<vmem>>, vector<32x128xf32>
    %cst_8 = arith.constant dense<0.000000e+00> : vector<128x128xf32>
    %9 = tpu.matmul %7, %8, %cst_8 {dimension_numbers = #tpu.dot_dimension_numbers<[1], [0], [0], [1], [0, 0, 1, 1], [], []>} : vector<128x32xf32>, vector<32x128xf32>, vector<128x128xf32> -> vector<128x128xf32>
    %c0_9 = arith.constant 0 : index
    %c0_10 = arith.constant 0 : index
    %10 = vector.load %arg5[%c0_9, %c0_10] : memref<1x128xf32, #tpu.memory_space<vmem>>, vector<1x128xf32>
    %11 = vector.broadcast %10 : vector<1x128xf32> to vector<128x128xf32>
    %12 = arith.addf %9, %11 : vector<128x128xf32>
    %c0_11 = arith.constant 0 : index
    %c0_12 = arith.constant 0 : index
    %13 = vector.load %arg6[%c0_11, %c0_12] : memref<128x128xf32, #tpu.memory_space<vmem>>, vector<128x128xf32>
    tpu.vector_store %arg6[%c0_11, %c0_12], %12 {strides = array<i32>} : memref<128x128xf32, #tpu.memory_space<vmem>>, vector<128x128xf32>,
    return
  }
  func.func @transform_0(%arg0: i32) -> (i32, i32) {
    %c0_i32 = arith.constant 0 : i32
    %c0_i32_0 = arith.constant 0 : i32
    return %arg0, %c0_i32 : i32, i32
  }
  func.func @transform_1(%arg0: i32) -> (i32, i32) {
    %c0_i32 = arith.constant 0 : i32
    %c0_i32_0 = arith.constant 0 : i32
    %c0_i32_1 = arith.constant 0 : i32
    return %c0_i32, %c0_i32_0 : i32, i32
  }
  func.func @transform_2(%arg0: i32) -> (i32, i32) {
    %c0_i32 = arith.constant 0 : i32
    %c0_i32_0 = arith.constant 0 : i32
    %c0_i32_1 = arith.constant 0 : i32
    return %c0_i32, %c0_i32_0 : i32, i32
  }
  func.func @transform_3(%arg0: i32) -> (i32, i32) {
    %c0_i32 = arith.constant 0 : i32
    %c0_i32_0 = arith.constant 0 : i32
    %c0_i32_1 = arith.constant 0 : i32
    return %c0_i32, %c0_i32_0 : i32, i32
  }
  func.func @transform_4(%arg0: i32) -> (i32, i32) {
    %c0_i32 = arith.constant 0 : i32
    %c0_i32_0 = arith.constant 0 : i32
    %c0_i32_1 = arith.constant 0 : i32
    return %c0_i32, %c0_i32_0 : i32, i32
  }
  func.func @transform_5(%arg0: i32) -> (i32, i32) {
    %c0_i32 = arith.constant 0 : i32
    %c0_i32_0 = arith.constant 0 : i32
    return %arg0, %c0_i32 : i32, i32
  }
}

</mosaic_0001>

<bundles_post_ra>
// kernel: linear_qnet_forward.1
= control target key start
LH: loop header
LB: loop body
LE: loop exit
PB: predicated region body
PF: predicated region fallthrough
CT: control target
= control target key end

     0   :  { %s950_s18 = smov 0   ;;  %s1066_s0 = inlined_call_operand.vmem [shape: f32[256,11], index: 0, kind: input, shape index: {}]   ;;  %s1067_s1 = inlined_call_operand.vmem [shape: f32[11,32], index: 1, kind: input, shape index: {}]   ;;  %s1068_s2 = inlined_call_operand.vmem [shape: f32[1,32], index: 2, kind: input, shape index: {}]   ;;  %s1069_s3 = inlined_call_operand.vmem [shape: f32[32,128], index: 3, kind: input, shape index: {}]   ;;  %s1070_s4 = inlined_call_operand.vmem [shape: f32[1,128], index: 4, kind: input, shape index: {}]   ;;  %s1071_s5 = inlined_call_operand.vmem [shape: f32[256,128], index: 5, kind: output, shape index: {}]  }
   0x1 LB: > { %s744_s19 = sadd.s32 4294967295, %s917_s18   ;;  %p748_p0 = scmp.ge.s32.totalorder %s917_s18, 1  ;;  %s917_s18 = sphi %s950_s18, %s15_s18  }
   0x2   : > { %p188_p1 = scmp.lt.s32.totalorder %s917_s18, 3 }
   0x4   : > { %p189_p2 = pnand %p748_p0, %p188_p1 }
   0x5   : > { %v244_v0 = vld [vmem:[%s1067_s1] sm:$0xff] (!%p189_p2)  ;;  %v245_v1 = vld [vmem:[%s1067_s1 + $0x8] sm:$0x7] (!%p189_p2)  ;;  %vm302_vm0 = vcmask (!%p189_p2), 1042432   ;;  %s749_s24 = sshll.u32 (!%p189_p2), %s744_s19, 4  ;;  %vm919_vm1 = vmmov (!%p189_p2), 1  }
   0x6   : > { %192 = sbr.rel (%p189_p2) target bundleno = 480 (0x1e0), region = 40  ;;  %v888_v2 = vpack.c.bf16 (!%p189_p2), %v245_v1, %v244_v0  ;;  %vm889_vm2 = vmpackc.low (!%p189_p2), %vm302_vm0, %vm919_vm1  ;;  %p217_p3 = scmp.lt.s32.totalorder (!%p189_p2), %s749_s24, 31  ;;  %v467_v3 = vld [vmem:[%s1069_s3] sm:$0xff] (!%p189_p2)  ;;  %v468_v4 = vld [vmem:[%s1069_s3 + $0x8] sm:$0xff] (!%p189_p2)  ;;  %vm253_vm3 = vcmask (!%p189_p2), 89088   ;;  %vm478_vm4 = vcmask (!%p189_p2), 261120  }
   0x7   : > { %v894_v5 = vpack.c.bf16 (!%p189_p2), %v468_v4, %v467_v3  ;;  %v469_v22 = vld [vmem:[%s1069_s3 + $0x10] sm:$0xff] (!%p189_p2)  ;;  %v470_v23 = vld [vmem:[%s1069_s3 + $0x18] sm:$0xff] (!%p189_p2)  ;;  %v753_v25 = vld [vmem:[%s1068_s2] ss:$0 sm:$0xff] (!%p189_p2) }
   0x8   : > { %890 = vmatprep.subr.msk.bf16.mxu0 (!%p189_p2), %vm889_vm2, %v888_v2  ;;  %v898_v24 = vpack.c.bf16 (!%p189_p2), %v470_v23, %v469_v22 }
   0x9   : > { %893 = vmatpush3.bf16.msk.msra.mxu0 (!%p189_p2), %vm889_vm2, %v888_v2  ;;  %895 = vmatprep.subr.bf16.mxu1 (!%p189_p2), %v894_v5 }
   0xa   : > { %897 = vmatpush3.bf16.msra.mxu1 (!%p189_p2), %v894_v5 }
   0xb   : > { %899 = vmatprep.subr.bf16.mxu1 (!%p189_p2), %v898_v24 }
   0xd   : > { %s1073_s24 = smov (!%p217_p3, %s749_s24), 31 }
   0xe   : > { %s750_s29 = sshll.u32 %s1073_s24, 3  ;;  %901 = vmatpush3.bf16.msra.mxu1 %v898_v24 }
   0xf   : > { %s978_s7 = scalar_lea.vmem %s1066_s0, %s750_s29  ;;  %s1045_s19 = scalar_lea.vmem %s1071_s5, %s750_s29 }
  0x10   : > { %v228_v6 = vld [vmem:[%s978_s7] sm:$0xff]  ;;  %v229_v7 = vld [vmem:[%s978_s7 + $0x8] sm:$0xff]  ;;  %v230_v8 = vld [vmem:[%s978_s7 + $0x10] sm:$0xff] }
  0x11   : > { %832 = vmatprep.mubr.msk.f32.mxu0 %vm253_vm3, %v228_v6  ;;  %v231_v9 = vld [vmem:[%s978_s7 + $0x18] sm:$0xff]  ;;  %v232_v10 = vld [vmem:[%s978_s7 + $0x20] sm:$0xff]  ;;  %v233_v11 = vld [vmem:[%s978_s7 + $0x28] sm:$0xff] }
  0x12   : > { %833 = vmatmul.mubr.msk.f32.vlgmr.msra.gmra.mrb[0].mxu0 %vm253_vm3, %v229_v7  ;;  %v234_v12 = vld [vmem:[%s978_s7 + $0x30] sm:$0xff]  ;;  %v235_v13 = vld [vmem:[%s978_s7 + $0x38] sm:$0xff]  ;;  %v236_v14 = vld [vmem:[%s978_s7 + $0x40] sm:$0xff] }
  0x13   : > { %835 = vmatprep.mubr.msk.f32.mxu0 %vm253_vm3, %v230_v8  ;;  %v237_v15 = vld [vmem:[%s978_s7 + $0x48] sm:$0xff]  ;;  %v238_v16 = vld [vmem:[%s978_s7 + $0x50] sm:$0xff]  ;;  %v239_v17 = vld [vmem:[%s978_s7 + $0x58] sm:$0xff] }
  0x14   : > { %v240_v18 = vld [vmem:[%s978_s7 + $0x60] sm:$0xff]  ;;  %v241_v19 = vld [vmem:[%s978_s7 + $0x68] sm:$0xff]  ;;  %v242_v20 = vld [vmem:[%s978_s7 + $0x70] sm:$0xff] }
  0x15   : > { %v243_v21 = vld [vmem:[%s978_s7 + $0x78] sm:$0xff] }
  0x16   : > { %836 = vmatmul.mubr.msk.f32.gmra.mrb[2].mxu0 %vm253_vm3, %v231_v9 }
  0x17   : > { %838 = vmatprep.mubr.msk.f32.mxu0 %vm253_vm3, %v232_v10  ;;  %v771_v10 = vld [vmem:[%s1070_s4] ss:$0 sm:$0xff] }
  0x1a   : > { %839 = vmatmul.mubr.msk.f32.gmra.mrb[4].mxu0 %vm253_vm3, %v233_v11 }
  0x1b   : > { %841 = vmatprep.mubr.msk.f32.mxu0 %vm253_vm3, %v234_v12 }
  0x1e   : > { %842 = vmatmul.mubr.msk.f32.gmra.mrb[6].mxu0 %vm253_vm3, %v235_v13 }
  0x1f   : > { %844 = vmatprep.mubr.msk.f32.mxu0 %vm253_vm3, %v236_v14 }
  0x22   : > { %845 = vmatmul.mubr.msk.f32.gmra.mrb[8].mxu0 %vm253_vm3, %v237_v15 }
  0x23   : > { %847 = vmatprep.mubr.msk.f32.mxu0 %vm253_vm3, %v238_v16 }
  0x26   : > { %848 = vmatmul.mubr.msk.f32.gmra.mrb[10].mxu0 %vm253_vm3, %v239_v17 }
  0x27   : > { %850 = vmatprep.mubr.msk.f32.mxu0 %vm253_vm3, %v240_v18 }
  0x2a   : > { %851 = vmatmul.mubr.msk.f32.gmra.mrb[12].mxu0 %vm253_vm3, %v241_v19 }
  0x2b   : > { %853 = vmatprep.mubr.msk.f32.mxu0 %vm253_vm3, %v242_v20 }
  0x2e   : > { %854 = vmatmul.mubr.msk.f32.gmra.mrb[14].mxu0 %vm253_vm3, %v243_v21 }
  0xe5   : > { %v834_v26 = vpop.f32.mrb[0].mxu0 }
  0xe6   : > { %v378_v27 = vadd.f32 %v834_v26, %v753_v25  ;;  %v372_v28 = vpop.f32.mrb[1].mxu0 }
  0xe7   : > { %v373_v29 = vadd.f32 %v753_v25, %v372_v28 }
  0xe8   : > { %v452_v32 = vmax.f32 %v378_v27, 0.0 }
  0xe9   : > { %v451_v30 = vmax.f32 %v373_v29, 0.0  ;;  %v837_v31 = vpop.f32.mrb[2].mxu0 }
  0xea   : > { %v388_v33 = vadd.f32 %v837_v31, %v753_v25  ;;  %v382_v34 = vpop.f32.mrb[3].mxu0 }
  0xeb   : > { %v383_v35 = vadd.f32 %v753_v25, %v382_v34  ;;  %864 = vmatprep.mubr.msk.f32.mxu1 %vm478_vm4, %v451_v30 }
  0xec   : > { %865 = vmatmul.mubr.msk.f32.vlgmr.msra.gmra.mrb[0].mxu1 %vm478_vm4, %v452_v32  ;;  %v454_v38 = vmax.f32 %v388_v33, 0.0 }
  0xed   : > { %v453_v36 = vmax.f32 %v383_v35, 0.0  ;;  %v840_v37 = vpop.f32.mrb[4].mxu0 }
  0xee   : > { %v398_v39 = vadd.f32 %v840_v37, %v753_v25  ;;  %v392_v40 = vpop.f32.mrb[5].mxu0 }
  0xef   : > { %v393_v41 = vadd.f32 %v753_v25, %v392_v40  ;;  %867 = vmatprep.mubr.msk.f32.mxu1 %vm478_vm4, %v453_v36 }
  0xf0   : > { %868 = vmatmul.mubr.msk.f32.gmra.mrb[2].mxu1 %vm478_vm4, %v454_v38  ;;  %v456_v44 = vmax.f32 %v398_v39, 0.0 }
  0xf1   : > { %v455_v42 = vmax.f32 %v393_v41, 0.0  ;;  %v843_v43 = vpop.f32.mrb[6].mxu0 }
  0xf2   : > { %v408_v45 = vadd.f32 %v843_v43, %v753_v25  ;;  %v402_v46 = vpop.f32.mrb[7].mxu0 }
  0xf3   : > { %v403_v47 = vadd.f32 %v753_v25, %v402_v46  ;;  %870 = vmatprep.mubr.msk.f32.mxu1 %vm478_vm4, %v455_v42 }
  0xf4   : > { %871 = vmatmul.mubr.msk.f32.gmra.mrb[4].mxu1 %vm478_vm4, %v456_v44  ;;  %v458_v50 = vmax.f32 %v408_v45, 0.0 }
  0xf5   : > { %v457_v48 = vmax.f32 %v403_v47, 0.0  ;;  %v846_v49 = vpop.f32.mrb[8].mxu0 }
  0xf6   : > { %v418_v51 = vadd.f32 %v846_v49, %v753_v25  ;;  %v412_v52 = vpop.f32.mrb[9].mxu0 }
  0xf7   : > { %v413_v53 = vadd.f32 %v753_v25, %v412_v52  ;;  %873 = vmatprep.mubr.msk.f32.mxu1 %vm478_vm4, %v457_v48 }
  0xf8   : > { %874 = vmatmul.mubr.msk.f32.gmra.mrb[6].mxu1 %vm478_vm4, %v458_v50  ;;  %v460_v56 = vmax.f32 %v418_v51, 0.0 }
  0xf9   : > { %v459_v54 = vmax.f32 %v413_v53, 0.0  ;;  %v849_v55 = vpop.f32.mrb[10].mxu0 }
  0xfa   : > { %v428_v57 = vadd.f32 %v849_v55, %v753_v25  ;;  %v422_v58 = vpop.f32.mrb[11].mxu0 }
  0xfb   : > { %v423_v59 = vadd.f32 %v753_v25, %v422_v58  ;;  %876 = vmatprep.mubr.msk.f32.mxu1 %vm478_vm4, %v459_v54 }
  0xfc   : > { %877 = vmatmul.mubr.msk.f32.gmra.mrb[8].mxu1 %vm478_vm4, %v460_v56  ;;  %v462_v62 = vmax.f32 %v428_v57, 0.0 }
  0xfd   : > { %v461_v60 = vmax.f32 %v423_v59, 0.0  ;;  %v852_v61 = vpop.f32.mrb[12].mxu0 }
  0xfe   : > { %v438_v63 = vadd.f32 %v852_v61, %v753_v25  ;;  %v432_v0 = vpop.f32.mrb[13].mxu0 }
  0xff   : > { %v433_v1 = vadd.f32 %v753_v25, %v432_v0  ;;  %879 = vmatprep.mubr.msk.f32.mxu1 %vm478_vm4, %v461_v60 }
 0x100   : > { %880 = vmatmul.mubr.msk.f32.gmra.mrb[10].mxu1 %vm478_vm4, %v462_v62  ;;  %v464_v4 = vmax.f32 %v438_v63, 0.0 }
 0x101   : > { %v463_v2 = vmax.f32 %v433_v1, 0.0  ;;  %v855_v3 = vpop.f32.mrb[14].mxu0 }
 0x102   : > { %v448_v5 = vadd.f32 %v855_v3, %v753_v25  ;;  %v442_v6 = vpop.f32.mrb[15].mxu0 }
 0x103   : > { %v443_v7 = vadd.f32 %v753_v25, %v442_v6  ;;  %882 = vmatprep.mubr.msk.f32.mxu1 %vm478_vm4, %v463_v2 }
 0x104   : > { %883 = vmatmul.mubr.msk.f32.gmra.mrb[12].mxu1 %vm478_vm4, %v464_v4  ;;  %v466_v9 = vmax.f32 %v448_v5, 0.0 }
 0x105   : > { %v465_v8 = vmax.f32 %v443_v7, 0.0 }
 0x107   : > { %885 = vmatprep.mubr.msk.f32.mxu1 %vm478_vm4, %v465_v8 }
 0x108   : > { %886 = vmatmul.mubr.msk.f32.gmra.mrb[14].mxu1 %vm478_vm4, %v466_v9 }
 0x1bf   : > { %v866_v11 = vpop.f32.mrb[0].mxu1 }
 0x1c0   : > { %v599_v12 = vadd.f32 %v866_v11, %v771_v10  ;;  %v593_v13 = vpop.f32.mrb[1].mxu1 }
 0x1c1   : > { %v594_v14 = vadd.f32 %v771_v10, %v593_v13 }
 0x1c2   : > { %673 = vst [vmem:[%s1045_s19 + $0x8] sm:$0xff] %v599_v12 }
 0x1c3   : > { %672 = vst [vmem:[%s1045_s19] sm:$0xff] %v594_v14  ;;  %v869_v15 = vpop.f32.mrb[2].mxu1 }
 0x1c4   : > { %v609_v16 = vadd.f32 %v869_v15, %v771_v10  ;;  %v603_v17 = vpop.f32.mrb[3].mxu1 }
 0x1c5   : > { %v604_v18 = vadd.f32 %v771_v10, %v603_v17 }
 0x1c6   : > { %675 = vst [vmem:[%s1045_s19 + $0x18] sm:$0xff] %v609_v16 }
 0x1c7   : > { %674 = vst [vmem:[%s1045_s19 + $0x10] sm:$0xff] %v604_v18  ;;  %v872_v19 = vpop.f32.mrb[4].mxu1 }
 0x1c8   : > { %v619_v20 = vadd.f32 %v872_v19, %v771_v10  ;;  %v613_v21 = vpop.f32.mrb[5].mxu1 }
 0x1c9   : > { %v614_v22 = vadd.f32 %v771_v10, %v613_v21 }
 0x1ca   : > { %677 = vst [vmem:[%s1045_s19 + $0x28] sm:$0xff] %v619_v20 }
 0x1cb   : > { %676 = vst [vmem:[%s1045_s19 + $0x20] sm:$0xff] %v614_v22  ;;  %v875_v23 = vpop.f32.mrb[6].mxu1 }
 0x1cc   : > { %v629_v24 = vadd.f32 %v875_v23, %v771_v10  ;;  %v623_v25 = vpop.f32.mrb[7].mxu1 }
 0x1cd   : > { %v624_v26 = vadd.f32 %v771_v10, %v623_v25 }
 0x1ce   : > { %679 = vst [vmem:[%s1045_s19 + $0x38] sm:$0xff] %v629_v24 }
 0x1cf   : > { %678 = vst [vmem:[%s1045_s19 + $0x30] sm:$0xff] %v624_v26  ;;  %v878_v27 = vpop.f32.mrb[8].mxu1 }
 0x1d0   : > { %v639_v28 = vadd.f32 %v878_v27, %v771_v10  ;;  %v633_v29 = vpop.f32.mrb[9].mxu1 }
 0x1d1   : > { %v634_v30 = vadd.f32 %v771_v10, %v633_v29 }
 0x1d2   : > { %681 = vst [vmem:[%s1045_s19 + $0x48] sm:$0xff] %v639_v28 }
 0x1d3   : > { %680 = vst [vmem:[%s1045_s19 + $0x40] sm:$0xff] %v634_v30  ;;  %v881_v31 = vpop.f32.mrb[10].mxu1 }
 0x1d4   : > { %v649_v32 = vadd.f32 %v881_v31, %v771_v10  ;;  %v643_v33 = vpop.f32.mrb[11].mxu1 }
 0x1d5   : > { %v644_v34 = vadd.f32 %v771_v10, %v643_v33 }
 0x1d6   : > { %683 = vst [vmem:[%s1045_s19 + $0x58] sm:$0xff] %v649_v32 }
 0x1d7   : > { %682 = vst [vmem:[%s1045_s19 + $0x50] sm:$0xff] %v644_v34  ;;  %v884_v35 = vpop.f32.mrb[12].mxu1 }
 0x1d8   : > { %v659_v36 = vadd.f32 %v884_v35, %v771_v10  ;;  %v653_v37 = vpop.f32.mrb[13].mxu1 }
 0x1d9   : > { %v654_v38 = vadd.f32 %v771_v10, %v653_v37 }
 0x1da   : > { %685 = vst [vmem:[%s1045_s19 + $0x68] sm:$0xff] %v659_v36 }
 0x1db   : > { %684 = vst [vmem:[%s1045_s19 + $0x60] sm:$0xff] %v654_v38  ;;  %v887_v39 = vpop.f32.mrb[14].mxu1 }
 0x1dc   : > { %v669_v40 = vadd.f32 %v887_v39, %v771_v10  ;;  %v663_v41 = vpop.f32.mrb[15].mxu1 }
 0x1dd   : > { %v664_v42 = vadd.f32 %v771_v10, %v663_v41 }
 0x1de   : > { %687 = vst [vmem:[%s1045_s19 + $0x78] sm:$0xff] %v669_v40 }
 0x1df   : > { %686 = vst [vmem:[%s1045_s19 + $0x70] sm:$0xff] %v664_v42 }
 0x1e0 PF: > { %s15_s18 = sadd.s32 1, %s917_s18  }
 0x1e1   : > { %p12_p4 = scmp.ge.s32.totalorder %s15_s18, 4  }
 0x1e3   :  { %14 = sbr.rel (!%p12_p4) target bundleno = 1 (0x1), region = 70 }

</bundles_post_ra>
